<compile_context>
chip_gen: v7x
topology: tpu7x:2x2x1
jax: 0.10.0
libtpu: 0.0.40
codegen_flags: <defaults>
</compile_context>

<pallas_src>
import functools

import jax
import jax.numpy as jnp
from jax.experimental import pallas as pl
from jax.experimental.pallas import tpu as pltpu


def _round_up(x, m):
    return (x + m - 1) // m * m


def _fused_mlp_kernel(x_ref, *refs, num_layers):
    """Whole MLP in one kernel invocation.

    refs = (w1, b1, w2, b2, ..., wL, bL, o_ref).
    x_ref: [TB, IN], wi: [IN_i, OUT_i], bi: [1, OUT_i], o_ref: [TB, OUT_PAD].
    Intermediates live in vregs; tanh on all layers except the last.
    """
    o_ref = refs[-1]
    param_refs = refs[:-1]
    s = x_ref[...]
    for li in range(num_layers):
        w = param_refs[2 * li][...]
        b = param_refs[2 * li + 1][...]
        s = jnp.dot(s, w, preferred_element_type=jnp.float32) + b
        if li < num_layers - 1:
            s = jnp.tanh(s)          # activation_function = tanh (EUP, free slot)
    o_ref[...] = s.astype(o_ref.dtype)


def init_mlp_params(layer_widths, key):
    """Deterministic init mimicking nn.Linear's uniform(-1/sqrt(in), 1/sqrt(in)).

    Biases are stored as (1, OUT) once here so the forward path never reshapes.
    """
    params = []
    for i in range(len(layer_widths) - 1):
        fan_in, fan_out = layer_widths[i], layer_widths[i + 1]
        key, kw, kb = jax.random.split(key, 3)
        bound = 1.0 / jnp.sqrt(jnp.float32(fan_in))
        w = jax.random.uniform(kw, (fan_in, fan_out), jnp.float32, -bound, bound)
        b = jax.random.uniform(kb, (1, fan_out), jnp.float32, -bound, bound)
        params.append((w, b))
    return params


def mlp_forward(x, params, *, max_tile_b=128):
    """Forward pass: tanh on all layers except the last. Single fused pallas_call."""
    B, IN = x.shape
    num_layers = len(params)
    out_dim = params[-1][0].shape[1]

    # Lane-dense output: zero-pad the last layer's OUT to a multiple of 128 so the
    # final store is an unmasked full-lane vst. Padding columns produce zeros and
    # are sliced off below — semantics unchanged.
    out_pad = _round_up(out_dim, 128)
    w_last, b_last = params[-1]
    if out_pad != out_dim:
        w_last = jnp.pad(w_last, ((0, 0), (0, out_pad - out_dim)))
        b_last = jnp.pad(b_last, ((0, 0), (0, out_pad - out_dim)))
    flat_params = []
    for w, b in params[:-1]:
        flat_params += [w, b]
    flat_params += [w_last, b_last]

    # Batch tiling: pad batch to a sublane multiple (8); tile at most 128 rows per
    # grid step so larger batches amortize the single launch and fill the MXU.
    if B <= max_tile_b:
        tile_b = _round_up(B, 8)
        b_pad = tile_b
    else:
        tile_b = max_tile_b
        b_pad = _round_up(B, tile_b)
    if b_pad != B:
        x = jnp.pad(x, ((0, b_pad - B), (0, 0)))

    grid = (b_pad // tile_b,)

    in_specs = [pl.BlockSpec((tile_b, IN), lambda i: (i, 0))]
    # All weights/biases (~KB at these widths) stay fully resident in VMEM.
    # TODO(synk): if layer widths grow (>= ~4096 fp32 hidden), add a K-reduction
    # grid axis + fp32 VMEM accumulator instead of whole-weight-resident blocks
    # (first cliff is v7x's 64 MiB VMEM).
    for p in flat_params:
        in_specs.append(pl.BlockSpec(p.shape, lambda i: (0, 0)))

    kernel = functools.partial(_fused_mlp_kernel, num_layers=num_layers)
    y = pl.pallas_call(
        kernel,
        out_shape=jax.ShapeDtypeStruct((b_pad, out_pad), jnp.float32),
        grid=grid,
        in_specs=in_specs,
        out_specs=pl.BlockSpec((tile_b, out_pad), lambda i: (i, 0)),
        compiler_params=pltpu.CompilerParams(
            dimension_semantics=("parallel",)),   # v7x: 2 TCs split batch tiles
    )(x, *flat_params)
    return y[:B, :out_dim]


def mlp_forward_ref(x, params):
    """Pure-JAX reference for correctness checking."""
    s = x
    for w, b in params[:-1]:
        s = jnp.tanh(s @ w + b)
    w_last, b_last = params[-1]
    return s @ w_last + b_last


if __name__ == "__main__":
    # layer_widths -> MLP: 16 -> 32 -> 32 -> 8, activation_function = tanh
    layer_widths = [16, 32, 32, 8]
    batch = 4

    key = jax.random.PRNGKey(0)
    key, kx = jax.random.split(key)
    x = jax.random.normal(kx, (batch, layer_widths[0]), jnp.float32)
    params = init_mlp_params(layer_widths, key)

    fwd = jax.jit(mlp_forward)          # pads/slices fuse around the single kernel
    y = fwd(x, params)
    y = jax.block_until_ready(y)

    y_ref = mlp_forward_ref(x, params)
    assert y.shape == (batch, layer_widths[-1])
    assert jnp.allclose(y, y_ref, atol=1e-5, rtol=1e-5), "mismatch vs reference"

    print("KERNEL_OK")
</pallas_src>

<mosaic_0001>
module attributes {stable_mosaic.version = 11 : i64} {
  func.func @_fused_mlp_kernel(%arg0: i32, %arg1: memref<8x16xf32, #tpu.memory_space<vmem>>, %arg2: memref<16x32xf32, #tpu.memory_space<vmem>>, %arg3: memref<1x32xf32, #tpu.memory_space<vmem>>, %arg4: memref<32x32xf32, #tpu.memory_space<vmem>>, %arg5: memref<1x32xf32, #tpu.memory_space<vmem>>, %arg6: memref<32x128xf32, #tpu.memory_space<vmem>>, %arg7: memref<1x128xf32, #tpu.memory_space<vmem>>, %arg8: memref<8x128xf32, #tpu.memory_space<vmem>>) attributes {dimension_semantics = [#tpu.dimension_semantics<parallel>], iteration_bounds = array<i64: 1>, scalar_prefetch = 0 : i64, scratch_operands = 0 : i64, tpu.core_type = #tpu.core_type<tc>, window_params = [{transform_indices = @transform_0, window_bounds = array<i64: 8, 16>}, {pipeline_mode = #tpu.pipeline_mode<synchronous>, transform_indices = @transform_1, window_bounds = array<i64: 16, 32>}, {pipeline_mode = #tpu.pipeline_mode<synchronous>, transform_indices = @transform_2, window_bounds = array<i64: 1, 32>}, {pipeline_mode = #tpu.pipeline_mode<synchronous>, transform_indices = @transform_3, window_bounds = array<i64: 32, 32>}, {pipeline_mode = #tpu.pipeline_mode<synchronous>, transform_indices = @transform_4, window_bounds = array<i64: 1, 32>}, {pipeline_mode = #tpu.pipeline_mode<synchronous>, transform_indices = @transform_5, window_bounds = array<i64: 32, 128>}, {pipeline_mode = #tpu.pipeline_mode<synchronous>, transform_indices = @transform_6, window_bounds = array<i64: 1, 128>}, {transform_indices = @transform_7, window_bounds = array<i64: 8, 128>}]} {
    %c0 = arith.constant 0 : index
    %c0_0 = arith.constant 0 : index
    %0 = vector.load %arg1[%c0, %c0_0] : memref<8x16xf32, #tpu.memory_space<vmem>>, vector<8x16xf32>
    %c0_1 = arith.constant 0 : index
    %c0_2 = arith.constant 0 : index
    %1 = vector.load %arg2[%c0_1, %c0_2] : memref<16x32xf32, #tpu.memory_space<vmem>>, vector<16x32xf32>
    %c0_3 = arith.constant 0 : index
    %c0_4 = arith.constant 0 : index
    %2 = vector.load %arg3[%c0_3, %c0_4] : memref<1x32xf32, #tpu.memory_space<vmem>>, vector<1x32xf32>
    %cst = arith.constant dense<0.000000e+00> : vector<8x32xf32>
    %3 = tpu.matmul %0, %1, %cst {dimension_numbers = #tpu.dot_dimension_numbers<[1], [0], [0], [1], [0, 0, 1, 1], [], []>} : vector<8x16xf32>, vector<16x32xf32>, vector<8x32xf32> -> vector<8x32xf32>
    %4 = vector.broadcast %2 : vector<1x32xf32> to vector<8x32xf32>
    %5 = arith.addf %3, %4 : vector<8x32xf32>
    %6 = math.tanh %5 : vector<8x32xf32>
    %c0_5 = arith.constant 0 : index
    %c0_6 = arith.constant 0 : index
    %7 = vector.load %arg4[%c0_5, %c0_6] : memref<32x32xf32, #tpu.memory_space<vmem>>, vector<32x32xf32>
    %c0_7 = arith.constant 0 : index
    %c0_8 = arith.constant 0 : index
    %8 = vector.load %arg5[%c0_7, %c0_8] : memref<1x32xf32, #tpu.memory_space<vmem>>, vector<1x32xf32>
    %cst_9 = arith.constant dense<0.000000e+00> : vector<8x32xf32>
    %9 = tpu.matmul %6, %7, %cst_9 {dimension_numbers = #tpu.dot_dimension_numbers<[1], [0], [0], [1], [0, 0, 1, 1], [], []>} : vector<8x32xf32>, vector<32x32xf32>, vector<8x32xf32> -> vector<8x32xf32>
    %10 = vector.broadcast %8 : vector<1x32xf32> to vector<8x32xf32>
    %11 = arith.addf %9, %10 : vector<8x32xf32>
    %12 = math.tanh %11 : vector<8x32xf32>
    %c0_10 = arith.constant 0 : index
    %c0_11 = arith.constant 0 : index
    %13 = vector.load %arg6[%c0_10, %c0_11] : memref<32x128xf32, #tpu.memory_space<vmem>>, vector<32x128xf32>
    %c0_12 = arith.constant 0 : index
    %c0_13 = arith.constant 0 : index
    %14 = vector.load %arg7[%c0_12, %c0_13] : memref<1x128xf32, #tpu.memory_space<vmem>>, vector<1x128xf32>
    %cst_14 = arith.constant dense<0.000000e+00> : vector<8x128xf32>
    %15 = tpu.matmul %12, %13, %cst_14 {dimension_numbers = #tpu.dot_dimension_numbers<[1], [0], [0], [1], [0, 0, 1, 1], [], []>} : vector<8x32xf32>, vector<32x128xf32>, vector<8x128xf32> -> vector<8x128xf32>
    %16 = vector.broadcast %14 : vector<1x128xf32> to vector<8x128xf32>
    %17 = arith.addf %15, %16 : vector<8x128xf32>
    %c0_15 = arith.constant 0 : index
    %c0_16 = arith.constant 0 : index
    %18 = vector.load %arg8[%c0_15, %c0_16] : memref<8x128xf32, #tpu.memory_space<vmem>>, vector<8x128xf32>
    tpu.vector_store %arg8[%c0_15, %c0_16], %17 {strides = array<i32>} : memref<8x128xf32, #tpu.memory_space<vmem>>, vector<8x128xf32>,
    return
  }
  func.func @transform_0(%arg0: i32) -> (i32, i32) {
    %c0_i32 = arith.constant 0 : i32
    %c0_i32_0 = arith.constant 0 : i32
    return %arg0, %c0_i32 : i32, i32
  }
  func.func @transform_1(%arg0: i32) -> (i32, i32) {
    %c0_i32 = arith.constant 0 : i32
    %c0_i32_0 = arith.constant 0 : i32
    %c0_i32_1 = arith.constant 0 : i32
    return %c0_i32, %c0_i32_0 : i32, i32
  }
  func.func @transform_2(%arg0: i32) -> (i32, i32) {
    %c0_i32 = arith.constant 0 : i32
    %c0_i32_0 = arith.constant 0 : i32
    %c0_i32_1 = arith.constant 0 : i32
    return %c0_i32, %c0_i32_0 : i32, i32
  }
  func.func @transform_3(%arg0: i32) -> (i32, i32) {
    %c0_i32 = arith.constant 0 : i32
    %c0_i32_0 = arith.constant 0 : i32
    %c0_i32_1 = arith.constant 0 : i32
    return %c0_i32, %c0_i32_0 : i32, i32
  }
  func.func @transform_4(%arg0: i32) -> (i32, i32) {
    %c0_i32 = arith.constant 0 : i32
    %c0_i32_0 = arith.constant 0 : i32
    %c0_i32_1 = arith.constant 0 : i32
    return %c0_i32, %c0_i32_0 : i32, i32
  }
  func.func @transform_5(%arg0: i32) -> (i32, i32) {
    %c0_i32 = arith.constant 0 : i32
    %c0_i32_0 = arith.constant 0 : i32
    %c0_i32_1 = arith.constant 0 : i32
    return %c0_i32, %c0_i32_0 : i32, i32
  }
  func.func @transform_6(%arg0: i32) -> (i32, i32) {
    %c0_i32 = arith.constant 0 : i32
    %c0_i32_0 = arith.constant 0 : i32
    %c0_i32_1 = arith.constant 0 : i32
    return %c0_i32, %c0_i32_0 : i32, i32
  }
  func.func @transform_7(%arg0: i32) -> (i32, i32) {
    %c0_i32 = arith.constant 0 : i32
    %c0_i32_0 = arith.constant 0 : i32
    return %arg0, %c0_i32 : i32, i32
  }
}

</mosaic_0001>

<bundles_post_ra>
// kernel: mlp_forward.1
= control target key start
LH: loop header
LB: loop body
LE: loop exit
PB: predicated region body
PF: predicated region fallthrough
CT: control target
= control target key end

     0   :  { %v356_v0 = vmov 0.0|0.0   ;;  %vm357_vm0 = vmmov 0   ;;  %v358_v3 = vmov 0.0   ;;  %vm36_vm1 = vcmask 130048   ;;  %s446_s1 = inlined_call_operand.vmem [shape: f32[16,32], index: 1, kind: input, shape index: {}]   ;;  %s447_s0 = inlined_call_operand.vmem [shape: f32[8,16], index: 0, kind: input, shape index: {}]   ;;  %s448_s3 = inlined_call_operand.vmem [shape: f32[32,32], index: 3, kind: input, shape index: {}]   ;;  %s449_s2 = inlined_call_operand.vmem [shape: f32[1,32], index: 2, kind: input, shape index: {}]   ;;  %s450_s5 = inlined_call_operand.vmem [shape: f32[32,128], index: 5, kind: input, shape index: {}]   ;;  %s451_s4 = inlined_call_operand.vmem [shape: f32[1,32], index: 4, kind: input, shape index: {}]   ;;  %s452_s6 = inlined_call_operand.vmem [shape: f32[1,128], index: 6, kind: input, shape index: {}]   ;;  %s453_s7 = inlined_call_operand.vmem [shape: f32[8,128], index: 7, kind: output, shape index: {}]  }
   0x1   :  { %334 = vmatprep.subr.bf16.mxu0 %v356_v0  ;;  %v27_v1 = vld [vmem:[%s446_s1] sm:$0xff]  ;;  %v28_v2 = vld [vmem:[%s446_s1 + $0x8] sm:$0xff]  ;;  %309 = vmatprep.mubr.msk.f32.mxu0 %vm357_vm0, %v358_v3  ;;  %v113_v8 = vld [vmem:[%s448_s3 + $0x10] sm:$0xff]  ;;  %vm122_vm2 = vcmask 261120  }
   0x2   :  { %v335_v4 = vpack.c.bf16 %v28_v2, %v27_v1  ;;  %337 = vmatprep.subr.bf16.mxu1 %v356_v0  ;;  %320 = vmatprep.mubr.msk.f32.mxu1 %vm357_vm0, %v358_v3  ;;  %v26_v5 = vld [vmem:[%s447_s0] sm:$0xff]  ;;  %v112_v7 = vld [vmem:[%s448_s3 + $0x8] sm:$0xff]  ;;  %v114_v10 = vld [vmem:[%s448_s3 + $0x18] sm:$0xff] }
   0x3   :  { %v111_v6 = vld [vmem:[%s448_s3] sm:$0xff]  ;;  %v341_v11 = vpack.c.bf16 %v114_v10, %v113_v8  ;;  %v198_v18 = vld [vmem:[%s450_s5 + $0x8] sm:$0xff]  ;;  %v199_v19 = vld [vmem:[%s450_s5 + $0x10] sm:$0xff] }
   0x4   :  { %336 = vmatpush3.bf16.msra.mxu0 %v335_v4  ;;  %v338_v9 = vpack.c.bf16 %v112_v7, %v111_v6  ;;  %v286_v12 = vld [vmem:[%s449_s2] ss:$0 sm:$0xff]  ;;  %v200_v21 = vld [vmem:[%s450_s5 + $0x18] sm:$0xff] }
   0x5   :  { %343 = vmatprep.subr.bf16.mxu0 %v356_v0  ;;  %v197_v17 = vld [vmem:[%s450_s5] sm:$0xff]  ;;  %v347_v22 = vpack.c.bf16 %v200_v21, %v199_v19 }
   0x6   :  { %339 = vmatpush3.bf16.msra.mxu1 %v338_v9  ;;  %v344_v20 = vpack.c.bf16 %v198_v18, %v197_v17  ;;  %v288_v23 = vld [vmem:[%s451_s4] ss:$0 sm:$0xff] }
   0x7   :  { %310 = vmatmul.mubr.msk.f32.vlgmr.msra.gmra.mrb[0].mxu0 %vm36_vm1, %v26_v5  ;;  %340 = vmatprep.subr.bf16.mxu1 %v356_v0  ;;  %v290_v28 = vld [vmem:[%s452_s6] ss:$0 sm:$0xff] }
   0x8   :  { %331 = vmatprep.mubr.msk.f32.mxu0 %vm357_vm0, %v358_v3  ;;  %345 = vmatpush3.bf16.msra.mxu0 %v344_v20 }
   0x9   :  { %346 = vmatprep.subr.bf16.mxu0 %v356_v0 }
   0xa   :  { %342 = vmatpush3.bf16.msra.mxu1 %v341_v11 }
   0xc   :  { %348 = vmatpush3.bf16.msra.mxu0 %v347_v22 }
  0xda   :  { %v106_v13 = vpop.f32.mrb[0].mxu0 }
  0xdb   :  { %v107_v14 = vadd.f32 %v286_v12, %v106_v13  ;;  %v311_v15 = vpop.f32.mrb[1].mxu0 }
  0xdd   :  { %352 = vtanh.f32 %v107_v14 }
  0xe7   :  { %v353_v16 = vpop.eup %352 }
  0xe8   :  { %321 = vmatmul.mubr.msk.f32.vlgmr.msra.gmra.mrb[0].mxu1 %vm122_vm2, %v353_v16 }
 0x1bb   :  { %v192_v24 = vpop.f32.mrb[0].mxu1 }
 0x1bc   :  { %v193_v25 = vadd.f32 %v288_v23, %v192_v24  ;;  %v322_v26 = vpop.f32.mrb[1].mxu1 }
 0x1be   :  { %354 = vtanh.f32 %v193_v25 }
 0x1c8   :  { %v355_v27 = vpop.eup %354 }
 0x1c9   :  { %332 = vmatmul.mubr.msk.f32.vlgmr.msra.gmra.mrb[2].mxu0 %vm122_vm2, %v355_v27 }
 0x29c   :  { %v277_v29 = vpop.f32.mrb[2].mxu0 }
 0x29d   :  { %v278_v30 = vadd.f32 %v290_v28, %v277_v29  ;;  %v333_v31 = vpop.f32.mrb[3].mxu0 }
 0x29f   :  { %281 = vst [vmem:[%s453_s7] sm:$0xff] %v278_v30 }

</bundles_post_ra>
